<compile_context>
chip_gen: v7x
topology: tpu7x:2x2x1
jax: 0.10.0
libtpu: 0.0.40
codegen_flags: <defaults>
</compile_context>

<pallas_src>
import math
import jax
import jax.numpy as jnp
from jax import lax
from jax.experimental import pallas as pl
from jax.experimental.pallas import tpu as pltpu


def _round_up(x, m):
    return ((x + m - 1) // m) * m


def _make_single_k_kernel(activation_fn, precision):
    """Whole reduction fits one K tile: dot + bias + act straight to output."""
    def kernel(x_ref, w_ref, b_ref, o_ref):
        y = lax.dot_general(x_ref[...], w_ref[...],
                            dimension_numbers=(((1,), (1,)), ((), ())),
                            preferred_element_type=jnp.float32,
                            precision=precision)
        y = y + b_ref[...]                       # [1, tile_fout] f32 broadcast
        o_ref[...] = activation_fn(y).astype(o_ref.dtype)
    return kernel


def _make_multi_k_kernel(activation_fn, precision):
    """K reduction grid axis with f32 VMEM accumulator (init/finalize pl.when)."""
    def kernel(x_ref, w_ref, b_ref, o_ref, acc_ref):
        k = pl.program_id(2)

        @pl.when(k == 0)
        def _():
            acc_ref[...] = jnp.zeros_like(acc_ref)

        acc_ref[...] += lax.dot_general(x_ref[...], w_ref[...],
                                        dimension_numbers=(((1,), (1,)), ((), ())),
                                        preferred_element_type=jnp.float32,
                                        precision=precision)

        @pl.when(k == pl.num_programs(2) - 1)
        def _():
            y = acc_ref[...] + b_ref[...]
            o_ref[...] = activation_fn(y).astype(o_ref.dtype)
    return kernel


def layer_forward(x, weight, bias, *, activation_fn=None,
                  tile_n=512, tile_fout=512, tile_k=1024,
                  compute_dtype=None, precision=None,
                  vmem_limit_bytes=None):
    """act(x @ weight.T + bias).

    x:      [N, in_features]
    weight: [out_features, in_features]   (native PyTorch nn.Linear layout)
    bias:   [out_features]
    activation_fn: traceable JAX elementwise callable (default ReLU).
    compute_dtype: dtype fed to the MXU (e.g. jnp.bfloat16 on v6e/v7x);
                   accumulation, bias-add and activation stay in f32.
    precision: lax matmul precision (e.g. Precision.HIGHEST for f32 parity).
    """
    if activation_fn is None:
        activation_fn = lambda v: jnp.maximum(v, 0.0)

    N, Fin = x.shape
    Fout, Fin_w = weight.shape
    assert Fin_w == Fin and bias.shape == (Fout,)
    out_dtype = x.dtype
    cd = compute_dtype if compute_dtype is not None else x.dtype

    # ---- padded problem sizes (only where required) -------------------------
    N_pad = N if N % 8 == 0 else _round_up(N, 8)
    Fout_pad = Fout if Fout % 128 == 0 else _round_up(Fout, 128)
    Fin_pad = Fin if Fin % 128 == 0 else _round_up(Fin, 128)

    # ---- tile clamping (lane-dense, (8,128)-legal) ---------------------------
    tile_n = min(tile_n, N_pad)                    # multiple of 8 (N_pad is)
    tile_fout = min(tile_fout, Fout_pad)           # multiple of 128

    # tile_k must exactly tile Fin_pad so the reduction only ever reads real
    # (zero-padded) data.  Pick the largest 128-multiple divisor of Fin_pad
    # that is <= the requested tile_k instead of over-padding K.
    units = Fin_pad // 128
    req = max(1, min(tile_k, Fin_pad) // 128)
    d = req
    while units % d:
        d -= 1
    if d * 128 < 512 and Fin_pad > 1024:
        # Pathological (prime-ish) Fin: accept minimal over-padding instead of
        # a tiny K tile that would explode the grid.
        tile_k = req * 128
        Fin_pad = _round_up(Fin_pad, tile_k)
    else:
        tile_k = d * 128

    grid_n = pl.cdiv(N_pad, tile_n)
    grid_f = pl.cdiv(Fout_pad, tile_fout)
    grid_k = Fin_pad // tile_k

    # ---- operands: pad / cast only when necessary (no transpose of W) -------
    x_c = x if x.dtype == cd else x.astype(cd)
    if (N_pad, Fin_pad) != (N, Fin):
        x_p = jnp.zeros((N_pad, Fin_pad), cd).at[:N, :Fin].set(x_c)
    else:
        x_p = x_c

    w_c = weight if weight.dtype == cd else weight.astype(cd)
    if (Fout_pad, Fin_pad) != (Fout, Fin):
        w_p = jnp.zeros((Fout_pad, Fin_pad), cd).at[:Fout, :Fin].set(w_c)
    else:
        w_p = w_c

    if Fout_pad != Fout:
        b_p = jnp.zeros((1, Fout_pad), jnp.float32).at[0, :Fout].set(
            bias.astype(jnp.float32))
    else:
        b_p = bias.astype(jnp.float32).reshape(1, Fout_pad)

    # ---- grid spec -----------------------------------------------------------
    if grid_k == 1:
        kernel = _make_single_k_kernel(activation_fn, precision)
        grid = (grid_n, grid_f)
        in_specs = [
            pl.BlockSpec((tile_n, tile_k), lambda i, j: (i, 0)),
            pl.BlockSpec((tile_fout, tile_k), lambda i, j: (j, 0)),
            pl.BlockSpec((1, tile_fout), lambda i, j: (0, j)),
        ]
        out_specs = pl.BlockSpec((tile_n, tile_fout), lambda i, j: (i, j))
        scratch_shapes = []
        dim_sem = ("parallel", "parallel")
    else:
        kernel = _make_multi_k_kernel(activation_fn, precision)
        grid = (grid_n, grid_f, grid_k)
        in_specs = [
            pl.BlockSpec((tile_n, tile_k), lambda i, j, k: (i, k)),
            pl.BlockSpec((tile_fout, tile_k), lambda i, j, k: (j, k)),
            pl.BlockSpec((1, tile_fout), lambda i, j, k: (0, j)),
        ]
        out_specs = pl.BlockSpec((tile_n, tile_fout), lambda i, j, k: (i, j))
        scratch_shapes = [pltpu.VMEM((tile_n, tile_fout), jnp.float32)]
        dim_sem = ("parallel", "parallel", "arbitrary")

    # ---- VMEM budget / cost estimate ----------------------------------------
    ic = jnp.dtype(cd).itemsize
    io = jnp.dtype(out_dtype).itemsize
    vmem_est = (2 * tile_n * tile_k * ic            # x double buffer
                + 2 * tile_fout * tile_k * ic       # W double buffer
                + 2 * tile_fout * 4                 # bias double buffer
                + 2 * tile_n * tile_fout * io       # out double buffer
                + (tile_n * tile_fout * 4 if grid_k > 1 else 0))  # f32 acc
    if vmem_limit_bytes is None:
        # Headroom above residency; floor 32 MiB, cap 48 MiB (v7x = 64 MiB/TC).
        vmem_limit_bytes = min(max(int(vmem_est * 3 // 2) + (2 << 20), 32 << 20),
                               48 << 20)

    cost = pl.CostEstimate(
        flops=2 * N_pad * Fin_pad * Fout_pad,
        transcendentals=0,
        bytes_accessed=(grid_f * N_pad * Fin_pad * ic
                        + grid_n * Fout_pad * Fin_pad * ic
                        + N_pad * Fout_pad * io),
    )

    out = pl.pallas_call(
        kernel,
        out_shape=jax.ShapeDtypeStruct((N_pad, Fout_pad), out_dtype),
        grid_spec=pltpu.PrefetchScalarGridSpec(
            num_scalar_prefetch=0,
            grid=grid,
            in_specs=in_specs,
            out_specs=out_specs,
            scratch_shapes=scratch_shapes),
        compiler_params=pltpu.CompilerParams(
            dimension_semantics=dim_sem,
            vmem_limit_bytes=vmem_limit_bytes),
        cost_estimate=cost,
    )(x_p, w_p, b_p)

    if (N_pad, Fout_pad) != (N, Fout):
        out = out[:N, :Fout]
    return out


def init_linear_params(key, in_features, out_features, dtype=jnp.float32):
    """Deterministic init matching nn.Linear default (uniform +-1/sqrt(fan_in))."""
    kw, kb = jax.random.split(key)
    bound = 1.0 / math.sqrt(in_features)
    w = jax.random.uniform(kw, (out_features, in_features), dtype,
                           minval=-bound, maxval=bound)
    b = jax.random.uniform(kb, (out_features,), dtype,
                           minval=-bound, maxval=bound)
    return w, b


if __name__ == "__main__":
    key = jax.random.PRNGKey(0)
    k1, k2, k3, k4, k5, k6 = jax.random.split(key, 6)

    # --- module-spec-sized case (hidden=32), ReLU: single-K fast path --------
    N, Fin, Fout = 8, 32, 32
    x = jax.random.normal(k1, (N, Fin), jnp.float32)
    w, b = init_linear_params(k2, Fin, Fout)
    out = jax.block_until_ready(layer_forward(x, w, b))
    ref = jnp.maximum(x @ w.T + b, 0.0)
    assert out.shape == (N, Fout)
    assert jnp.allclose(out, ref, atol=1e-2, rtol=1e-2)

    # --- larger case: default tiles (single K step, aligned-shape no-pad path
    # on the Fout axis) and a forced multi-K accumulator path ------------------
    N2, Fin2, Fout2 = 512, 384, 256
    x2 = jax.random.normal(k3, (N2, Fin2), jnp.float32)
    w2, b2 = init_linear_params(k4, Fin2, Fout2)
    ref2 = jnp.maximum(x2 @ w2.T + b2, 0.0)
    out2 = jax.block_until_ready(layer_forward(x2, w2, b2))
    assert jnp.allclose(out2, ref2, atol=2e-2, rtol=2e-2)

    out2_mk = jax.block_until_ready(layer_forward(x2, w2, b2, tile_k=128))
    assert jnp.allclose(out2_mk, ref2, atol=2e-2, rtol=2e-2)

    # bf16 MXU compute path (f32 accumulation) — recommended on v6e/v7x.
    out2_bf16 = jax.block_until_ready(
        layer_forward(x2, w2, b2, compute_dtype=jnp.bfloat16))
    assert jnp.allclose(out2_bf16, ref2, atol=0.1, rtol=0.1)

    # --- odd (non-multiple) shapes + a different activation (GELU) -----------
    N3, Fin3, Fout3 = 300, 200, 72
    x3 = jax.random.normal(k5, (N3, Fin3), jnp.float32)
    w3, b3 = init_linear_params(k6, Fin3, Fout3)
    out3 = jax.block_until_ready(
        layer_forward(x3, w3, b3, activation_fn=jax.nn.gelu))
    ref3 = jax.nn.gelu(x3 @ w3.T + b3)
    assert out3.shape == (N3, Fout3)
    assert jnp.allclose(out3, ref3, atol=2e-2, rtol=2e-2)

    # TODO(synk): arbitrary torch nn.Module activations (learned / stateful)
    # are not translatable; any traceable JAX elementwise fn is supported.
    print("KERNEL_OK")
</pallas_src>

<mosaic_0001>
module attributes {stable_mosaic.version = 11 : i64} {
  func.func @kernel(%arg0: i32, %arg1: i32, %arg2: memref<8x128xf32, #tpu.memory_space<vmem>>, %arg3: memref<128x128xf32, #tpu.memory_space<vmem>>, %arg4: memref<1x128xf32, #tpu.memory_space<vmem>>, %arg5: memref<8x128xf32, #tpu.memory_space<vmem>>) attributes {dimension_semantics = [#tpu.dimension_semantics<parallel>, #tpu.dimension_semantics<parallel>], iteration_bounds = array<i64: 1, 1>, scalar_prefetch = 0 : i64, scratch_operands = 0 : i64, tpu.core_type = #tpu.core_type<tc>, window_params = [{transform_indices = @transform_0, window_bounds = array<i64: 8, 128>}, {transform_indices = @transform_1, window_bounds = array<i64: 128, 128>}, {transform_indices = @transform_2, window_bounds = array<i64: 1, 128>}, {transform_indices = @transform_3, window_bounds = array<i64: 8, 128>}]} {
    %c0 = arith.constant 0 : index
    %c0_0 = arith.constant 0 : index
    %0 = vector.load %arg2[%c0, %c0_0] : memref<8x128xf32, #tpu.memory_space<vmem>>, vector<8x128xf32>
    %c0_1 = arith.constant 0 : index
    %c0_2 = arith.constant 0 : index
    %1 = vector.load %arg3[%c0_1, %c0_2] : memref<128x128xf32, #tpu.memory_space<vmem>>, vector<128x128xf32>
    %cst = arith.constant dense<0.000000e+00> : vector<8x128xf32>
    %2 = tpu.matmul %0, %1, %cst {dimension_numbers = #tpu.dot_dimension_numbers<[1], [1], [0], [0], [0, 0, 1, 0], [], []>} : vector<8x128xf32>, vector<128x128xf32>, vector<8x128xf32> -> vector<8x128xf32>
    %c0_3 = arith.constant 0 : index
    %c0_4 = arith.constant 0 : index
    %3 = vector.load %arg4[%c0_3, %c0_4] : memref<1x128xf32, #tpu.memory_space<vmem>>, vector<1x128xf32>
    %4 = vector.broadcast %3 : vector<1x128xf32> to vector<8x128xf32>
    %5 = arith.addf %2, %4 : vector<8x128xf32>
    %cst_5 = arith.constant 0.000000e+00 : f32
    %6 = vector.broadcast %cst_5 : f32 to vector<8x128xf32>
    %7 = arith.maximumf %5, %6 : vector<8x128xf32>
    %c0_6 = arith.constant 0 : index
    %c0_7 = arith.constant 0 : index
    %8 = vector.load %arg5[%c0_6, %c0_7] : memref<8x128xf32, #tpu.memory_space<vmem>>, vector<8x128xf32>
    tpu.vector_store %arg5[%c0_6, %c0_7], %7 {strides = array<i32>} : memref<8x128xf32, #tpu.memory_space<vmem>>, vector<8x128xf32>,
    return
  }
  func.func @transform_0(%arg0: i32, %arg1: i32) -> (i32, i32) {
    %c0_i32 = arith.constant 0 : i32
    %c0_i32_0 = arith.constant 0 : i32
    return %arg0, %c0_i32 : i32, i32
  }
  func.func @transform_1(%arg0: i32, %arg1: i32) -> (i32, i32) {
    %c0_i32 = arith.constant 0 : i32
    %c0_i32_0 = arith.constant 0 : i32
    return %arg1, %c0_i32 : i32, i32
  }
  func.func @transform_2(%arg0: i32, %arg1: i32) -> (i32, i32) {
    %c0_i32 = arith.constant 0 : i32
    %c0_i32_0 = arith.constant 0 : i32
    return %c0_i32, %arg1 : i32, i32
  }
  func.func @transform_3(%arg0: i32, %arg1: i32) -> (i32, i32) {
    %c0_i32 = arith.constant 0 : i32
    return %arg0, %arg1 : i32, i32
  }
}

</mosaic_0001>

<bundles_post_ra>
// kernel: tpu_custom_call.1
= control target key start
LH: loop header
LB: loop body
LE: loop exit
PB: predicated region body
PF: predicated region fallthrough
CT: control target
= control target key end

     0   :  { %8 = vsyncpa [#allocation3], 0  ;;  %s384_s0 = inlined_call_operand.hbm [shape: f32[8,128], index: 0, kind: input, shape index: {}]   ;;  %s385_s1 = inlined_call_operand.hbm [shape: f32[128,128], index: 1, kind: input, shape index: {}]   ;;  %s386_s2 = inlined_call_operand.vmem [shape: f32[1,128], index: 2, kind: input, shape index: {}]   ;;  %s387_s3 = inlined_call_operand.hbm [shape: f32[8,128], index: 3, kind: output, shape index: {}]  }
   0x1   :  { %9 = vsyncpa [#allocation6], 0 }
   0x2   :  { %10 = vsyncpa [#allocation4], 0  ;;  %s310_s12 = smov [#allocation2]   ;;  %s311_s14 = smov [#allocation5]  }
   0x3   :  { %s17_s13 = sshll.u32 %s310_s12, 4  ;;  %s26_s15 = sshll.u32 %s311_s14, 4  ;;  %s18_s13 = int_to_ptr.vmem [resolvable:$true] %s17_s13  ;;  %s338_s15 = int_to_ptr.vmem [resolvable:$true] %s26_s15 }
   0x4   :  { %s238_s18 = scalar_lea.hbm %s384_s0, 128 }
   0x5   :  { %p239_p0 = scmp.ne.s32.totalorder %s384_s0, %s238_s18  ;;  %p242_p1 = scmp.lt.u32.totalorder %s238_s18, %s384_s0 }
   0x7   :  { %p244_p2 = pnand %p242_p1, %p239_p0 }
   0x9   :  { %247 = shalt.err (!%p244_p2)
}
   0xa   :  { %s248_s23 = scalar_lea.vmem %s18_s13, 128  ;;  %p253_p4 = scmp.lt.s32.totalorder %s18_s13, %s18_s13 }
   0xb   :  { %p249_p3 = scmp.ne.s32.totalorder %s18_s13, %s248_s23  ;;  %p254_p5 = scmp.lt.s32.totalorder %s248_s23, %s248_s23 }
   0xd   :  { %p255_p6 = por %p254_p5, %p253_p4 }
   0xf   :  { %p256_p7 = pnand %p255_p6, %p249_p3 }
  0x11   :  { %259 = shalt.err (!%p256_p7)
}
  0x12   :  { %20 = dma.hbm_to_vmem [thread:$0]  %s384_s0, 128, %s18_s13, [#allocation3]  }
  0x13   :  { %s260_s28 = scalar_lea.hbm %s385_s1, 2048 }
  0x14   :  { %p261_p8 = scmp.ne.s32.totalorder %s385_s1, %s260_s28  ;;  %p264_p9 = scmp.lt.u32.totalorder %s260_s28, %s385_s1 }
  0x16   :  { %p266_p10 = pnand %p264_p9, %p261_p8 }
  0x18   :  { %269 = shalt.err (!%p266_p10)
}
  0x19   :  { %s270_s6 = scalar_lea.vmem %s338_s15, 2048  ;;  %p275_p12 = scmp.lt.s32.totalorder %s338_s15, %s338_s15 }
  0x1a   :  { %p271_p11 = scmp.ne.s32.totalorder %s338_s15, %s270_s6  ;;  %p276_p13 = scmp.lt.s32.totalorder %s270_s6, %s270_s6 }
  0x1c   :  { %p277_p0 = por %p276_p13, %p275_p12 }
  0x1e   :  { %p278_p1 = pnand %p277_p0, %p271_p11 }
  0x20   :  { %281 = shalt.err (!%p278_p1)
}
  0x21   :  { %s312_s0 = smov 128   ;;  %s313_s7 = smov 8  }
  0x22   :  { %32 = dma.hbm_to_vmem [thread:$0]  %s385_s1, 2048, %s338_s15, [#allocation6], %s312_s0, %s312_s0, %s313_s7  }
  0x23   :  { %304 = dma.done.wait [#allocation3], 128  }
  0x24   :  { %305 = vsyncadd [#allocation3], 4294967168 }
  0x25   :  { %306 = dma.done.wait [#allocation6], 2048  }
  0x26   :  { %307 = vsyncadd [#allocation6], 4294965248  ;;  %v314_v0 = vmov 0.0|0.0   ;;  %vm315_vm0 = vmmov 0   ;;  %v316_v1 = vmov 0.0   ;;  %v42_v2 = vld [vmem:[#allocation5] sm:$0xff] }
  0x27   :  { %206 = vmatprep.subr.bf16.mxu0 %v314_v0  ;;  %203 = vmatprep.mubr.msk.f32.mxu0 %vm315_vm0, %v316_v1  ;;  %v43_v3 = vld [vmem:[#allocation5 + $0x8] sm:$0xff]  ;;  %v44_v5 = vld [vmem:[#allocation5 + $0x10] sm:$0xff]  ;;  %v45_v6 = vld [vmem:[#allocation5 + $0x18] sm:$0xff]  ;;  %s317_s11 = smov [#allocation7]  }
  0x28   :  { %v207_v4 = vpack.c.bf16 %v43_v3, %v42_v2  ;;  %v210_v7 = vpack.c.bf16 %v45_v6, %v44_v5  ;;  %v46_v8 = vld [vmem:[#allocation5 + $0x20] sm:$0xff]  ;;  %v47_v9 = vld [vmem:[#allocation5 + $0x28] sm:$0xff]  ;;  %v48_v11 = vld [vmem:[#allocation5 + $0x30] sm:$0xff]  ;;  %s143_s12 = sshll.u32 %s317_s11, 4  ;;  %s144_s12 = int_to_ptr.vmem [resolvable:$true] %s143_s12 }
  0x29   :  { %v213_v10 = vpack.c.bf16 %v47_v9, %v46_v8  ;;  %v49_v12 = vld [vmem:[#allocation5 + $0x38] sm:$0xff]  ;;  %v50_v14 = vld [vmem:[#allocation5 + $0x40] sm:$0xff]  ;;  %v51_v15 = vld [vmem:[#allocation5 + $0x48] sm:$0xff]  ;;  %s282_s13 = scalar_lea.vmem %s144_s12, 128  ;;  %p287_p3 = scmp.lt.s32.totalorder %s144_s12, %s144_s12 }
  0x2a   :  { %208 = vmatpush3.bf16.xpose.msra.mxu0 %v207_v4  ;;  %v216_v13 = vpack.c.bf16 %v49_v12, %v48_v11  ;;  %v219_v16 = vpack.c.bf16 %v51_v15, %v50_v14  ;;  %v52_v17 = vld [vmem:[#allocation5 + $0x50] sm:$0xff]  ;;  %v53_v18 = vld [vmem:[#allocation5 + $0x58] sm:$0xff]  ;;  %v54_v20 = vld [vmem:[#allocation5 + $0x60] sm:$0xff]  ;;  %p283_p2 = scmp.ne.s32.totalorder %s144_s12, %s282_s13  ;;  %p288_p4 = scmp.lt.s32.totalorder %s282_s13, %s282_s13 }
  0x2b   :  { %209 = vmatprep.subr.bf16.mxu0 %v314_v0  ;;  %v222_v19 = vpack.c.bf16 %v53_v18, %v52_v17  ;;  %v55_v21 = vld [vmem:[#allocation5 + $0x68] sm:$0xff]  ;;  %v56_v23 = vld [vmem:[#allocation5 + $0x70] sm:$0xff]  ;;  %v57_v24 = vld [vmem:[#allocation5 + $0x78] sm:$0xff] }
  0x2c   :  { %v225_v22 = vpack.c.bf16 %v55_v21, %v54_v20  ;;  %v228_v25 = vpack.c.bf16 %v57_v24, %v56_v23  ;;  %v41_v26 = vld [vmem:[#allocation2] sm:$0xff]  ;;  %p289_p5 = por %p288_p4, %p287_p3 }
  0x2d   :  { %v153_v27 = vld [vmem:[%s386_s2] ss:$0 sm:$0xff] }
  0x2e   :  { %p290_p6 = pnand %p289_p5, %p283_p2 }
  0x32   :  { %211 = vmatpush3.bf16.xpose.msra.mxu0 %v210_v7 }
  0x33   :  { %212 = vmatprep.subr.bf16.mxu0 %v314_v0 }
  0x3a   :  { %214 = vmatpush3.bf16.xpose.msra.mxu0 %v213_v10 }
  0x3b   :  { %215 = vmatprep.subr.bf16.mxu0 %v314_v0 }
  0x42   :  { %217 = vmatpush3.bf16.xpose.msra.mxu0 %v216_v13 }
  0x43   :  { %218 = vmatprep.subr.bf16.mxu0 %v314_v0 }
  0x4a   :  { %220 = vmatpush3.bf16.xpose.msra.mxu0 %v219_v16 }
  0x4b   :  { %221 = vmatprep.subr.bf16.mxu0 %v314_v0 }
  0x52   :  { %223 = vmatpush3.bf16.xpose.msra.mxu0 %v222_v19 }
  0x53   :  { %224 = vmatprep.subr.bf16.mxu0 %v314_v0 }
  0x5a   :  { %226 = vmatpush3.bf16.xpose.msra.mxu0 %v225_v22 }
  0x5b   :  { %227 = vmatprep.subr.bf16.mxu0 %v314_v0 }
  0x62   :  { %229 = vmatpush3.bf16.xpose.msra.mxu0 %v228_v25 }
  0x69   :  { %204 = vmatmul.mubr.f32.vlgmr.msra.gmra.mrb[0].mxu0 %v41_v26 }
 0x13c   :  { %v131_v28 = vpop.f32.mrb[0].mxu0 }
 0x13d   :  { %v132_v29 = vadd.f32 %v153_v27, %v131_v28  ;;  %v205_v30 = vpop.f32.mrb[1].mxu0 }
 0x13f   :  { %v135_v31 = vmax.f32 %v132_v29, 0.0 }
 0x141   :  { %136 = vst [vmem:[#allocation7] sm:$0xff] %v135_v31 }
 0x142   :  { %293 = shalt.err (!%p290_p6)
}
 0x143   :  { %s294_s16 = scalar_lea.hbm %s387_s3, 128 }
 0x144   :  { %p295_p7 = scmp.ne.s32.totalorder %s387_s3, %s294_s16  ;;  %p298_p8 = scmp.lt.u32.totalorder %s294_s16, %s387_s3 }
 0x146   :  { %p300_p9 = pnand %p298_p8, %p295_p7 }
 0x148   :  { %303 = shalt.err (!%p300_p9)
}
 0x149   :  { %146 = dma.vmem_to_hbm [thread:$0]  %s144_s12, 128, %s387_s3, [#allocation4]  }
 0x14a   :  { %308 = dma.done.wait [#allocation4], 128  }
 0x14b   :  { %309 = vsyncadd [#allocation4], 4294967168 }
 0x14c   :  { %150 = vsyncpa [#allocation3], 1 }
 0x14d   :  { %151 = vsyncpa [#allocation6], 1 }
 0x14e   :  { %152 = vsyncpa [#allocation4], 1 }

</bundles_post_ra>
